<compile_context>
chip_gen: v7x
topology: tpu7x:2x2x1
jax: 0.10.0
libtpu: 0.0.40
codegen_flags: <defaults>
</compile_context>

<pallas_src>
import functools
import math

import numpy as np

import jax
import jax.numpy as jnp
from jax import lax
from jax.experimental import pallas as pl
from jax.experimental.pallas import tpu as pltpu


# ------------------------------ Pallas kernel ------------------------------ #

def _aa_interp_kernel(x_ref, av_ref, aht_ref, o_ref):
    # x:   (1, H, W)      one (n, c) plane
    # av:  (Hout, H)      vertical  Gaussian-blur + pad + nearest-subsample matrix
    # aht: (W, Wout)      horizontal counterpart (already transposed)
    # o:   (1, Hout, Wout)
    x = x_ref[0]
    t = jnp.dot(av_ref[...], x, preferred_element_type=jnp.float32)       # (Hout, W)
    o_ref[0] = jnp.dot(t, aht_ref[...], preferred_element_type=jnp.float32)


# ------------------------------ helpers (glue) ------------------------------ #

def _gaussian_params(scale):
    sigma = (1.0 / scale - 1.0) / 2.0
    kernel_size = 2 * round(sigma * 4) + 1
    ka = kernel_size // 2
    kb = ka - 1 if kernel_size % 2 == 0 else ka
    return sigma, kernel_size, ka, kb


def _gaussian_1d(kernel_size, sigma):
    xs = np.arange(kernel_size, dtype=np.float64)
    mean = (kernel_size - 1) / 2.0
    g = np.exp(-((xs - mean) ** 2) / (2.0 * sigma ** 2))
    return g / g.sum()


def _band_matrix(out_size, in_size, g, ka):
    """A[i, h] = g[h - src(i) + ka] inside the (zero-pad-truncated) blur window.

    Encodes: zero pad by (ka, kb), valid depthwise conv with the 1D Gaussian,
    then nearest-neighbour row selection src(i) = floor(i * in / out).
    """
    k = g.shape[0]
    src = (np.arange(out_size, dtype=np.int64) * in_size) // out_size
    off = np.arange(in_size, dtype=np.int64)[None, :] - src[:, None] + ka
    valid = (off >= 0) & (off < k)
    A = np.where(valid, g[np.clip(off, 0, k - 1)], 0.0)
    return A.astype(np.float32)


# ------------------------------ public wrapper ------------------------------ #

def anti_alias_interpolation2d(x, channels, scale):
    """Pallas TPU implementation of AntiAliasInterpolation2d.forward (NCHW)."""
    if scale == 1.0:
        return x

    N, C, H, W = x.shape
    assert C == channels

    sigma, kernel_size, ka, _kb = _gaussian_params(scale)
    Hout = int(math.floor(H * scale))
    Wout = int(math.floor(W * scale))

    g = _gaussian_1d(kernel_size, sigma)
    av = jnp.asarray(_band_matrix(Hout, H, g, ka))        # (Hout, H)
    aht = jnp.asarray(_band_matrix(Wout, W, g, ka).T)     # (W, Wout)

    planes = x.reshape(N * C, H, W).astype(jnp.float32)

    out = pl.pallas_call(
        _aa_interp_kernel,
        out_shape=jax.ShapeDtypeStruct((N * C, Hout, Wout), jnp.float32),
        grid=(N * C,),
        in_specs=[
            pl.BlockSpec((1, H, W), lambda i: (i, 0, 0)),
            pl.BlockSpec((Hout, H), lambda i: (0, 0)),     # constant block: DMA'd once
            pl.BlockSpec((W, Wout), lambda i: (0, 0)),     # constant block: DMA'd once
        ],
        out_specs=pl.BlockSpec((1, Hout, Wout), lambda i: (i, 0, 0)),
        compiler_params=pltpu.CompilerParams(
            dimension_semantics=("parallel",),
        ),
    )(planes, av, aht)

    return out.reshape(N, C, Hout, Wout)


# --------------------------- plain-JAX reference ---------------------------- #

def reference_aa(x, channels, scale):
    """Direct translation of the PyTorch forward (pad + depthwise conv + nearest)."""
    if scale == 1.0:
        return x
    N, C, H, W = x.shape
    sigma, kernel_size, ka, kb = _gaussian_params(scale)

    xs = np.arange(kernel_size, dtype=np.float64)
    mean = (kernel_size - 1) / 2.0
    e = np.exp(-((xs - mean) ** 2) / (2.0 * sigma ** 2))
    g2d = np.outer(e, e)
    g2d = g2d / g2d.sum()
    weight = jnp.asarray(np.tile(g2d[None, None], (channels, 1, 1, 1)).astype(np.float32))

    xp = jnp.pad(x.astype(jnp.float32), ((0, 0), (0, 0), (ka, kb), (ka, kb)))
    blurred = lax.conv_general_dilated(
        xp, weight, window_strides=(1, 1), padding="VALID",
        dimension_numbers=("NCHW", "OIHW", "NCHW"),
        feature_group_count=channels,
        precision=lax.Precision.HIGHEST,
    )
    Hout = int(math.floor(H * scale))
    Wout = int(math.floor(W * scale))
    hi = (jnp.arange(Hout) * H) // Hout
    wi = (jnp.arange(Wout) * W) // Wout
    return jnp.take(jnp.take(blurred, hi, axis=2), wi, axis=3)


# ----------------------------------- main ----------------------------------- #

if __name__ == "__main__":
    key = jax.random.PRNGKey(0)
    N, C, H, W = 2, 4, 16, 16
    x = jax.random.uniform(key, (N, C, H, W), jnp.float32)

    # scale = 0.25 -> sigma = 1.5, 13x13 Gaussian, 4x nearest downsample
    scale = 0.25
    fn = jax.jit(functools.partial(anti_alias_interpolation2d, channels=C, scale=scale))
    out = jax.block_until_ready(fn(x))
    ref = jax.block_until_ready(reference_aa(x, C, scale))
    assert out.shape == (N, C, int(H * scale), int(W * scale))
    assert bool(jnp.all(jnp.isfinite(out)))
    err = float(jnp.max(jnp.abs(out - ref)))
    assert err < 5e-3, f"scale=0.25 max abs err {err}"

    # scale = 0.5 -> sigma = 0.5, 5x5 Gaussian, 2x nearest downsample
    scale2 = 0.5
    fn2 = jax.jit(functools.partial(anti_alias_interpolation2d, channels=C, scale=scale2))
    out2 = jax.block_until_ready(fn2(x))
    ref2 = jax.block_until_ready(reference_aa(x, C, scale2))
    err2 = float(jnp.max(jnp.abs(out2 - ref2)))
    assert out2.shape == (N, C, 8, 8) and err2 < 5e-3, f"scale=0.5 max abs err {err2}"

    print("KERNEL_OK")
</pallas_src>

<mosaic_0001>
module attributes {stable_mosaic.version = 11 : i64} {
  func.func @_aa_interp_kernel(%arg0: i32, %arg1: memref<1x16x16xf32, #tpu.memory_space<vmem>>, %arg2: memref<4x16xf32, #tpu.memory_space<vmem>>, %arg3: memref<16x4xf32, #tpu.memory_space<vmem>>, %arg4: memref<1x4x4xf32, #tpu.memory_space<vmem>>) attributes {dimension_semantics = [#tpu.dimension_semantics<parallel>], iteration_bounds = array<i64: 8>, scalar_prefetch = 0 : i64, scratch_operands = 0 : i64, tpu.core_type = #tpu.core_type<tc>, window_params = [{transform_indices = @transform_0, window_bounds = array<i64: 1, 16, 16>}, {pipeline_mode = #tpu.pipeline_mode<synchronous>, transform_indices = @transform_1, window_bounds = array<i64: 4, 16>}, {pipeline_mode = #tpu.pipeline_mode<synchronous>, transform_indices = @transform_2, window_bounds = array<i64: 16, 4>}, {transform_indices = @transform_3, window_bounds = array<i64: 1, 4, 4>}]} {
    %c0 = arith.constant 0 : index
    %c0_0 = arith.constant 0 : index
    %c0_1 = arith.constant 0 : index
    %0 = vector.load %arg1[%c0, %c0_0, %c0_1] : memref<1x16x16xf32, #tpu.memory_space<vmem>>, vector<1x16x16xf32>
    %1 = vector.shape_cast %0 : vector<1x16x16xf32> to vector<16x16xf32>
    %c0_2 = arith.constant 0 : index
    %c0_3 = arith.constant 0 : index
    %2 = vector.load %arg2[%c0_2, %c0_3] : memref<4x16xf32, #tpu.memory_space<vmem>>, vector<4x16xf32>
    %cst = arith.constant dense<0.000000e+00> : vector<4x16xf32>
    %3 = tpu.matmul %2, %1, %cst {dimension_numbers = #tpu.dot_dimension_numbers<[1], [0], [0], [1], [0, 0, 1, 1], [], []>} : vector<4x16xf32>, vector<16x16xf32>, vector<4x16xf32> -> vector<4x16xf32>
    %c0_4 = arith.constant 0 : index
    %c0_5 = arith.constant 0 : index
    %4 = vector.load %arg3[%c0_4, %c0_5] : memref<16x4xf32, #tpu.memory_space<vmem>>, vector<16x4xf32>
    %cst_6 = arith.constant dense<0.000000e+00> : vector<4x4xf32>
    %5 = tpu.matmul %3, %4, %cst_6 {dimension_numbers = #tpu.dot_dimension_numbers<[1], [0], [0], [1], [0, 0, 1, 1], [], []>} : vector<4x16xf32>, vector<16x4xf32>, vector<4x4xf32> -> vector<4x4xf32>
    %c0_7 = arith.constant 0 : index
    %c0_8 = arith.constant 0 : index
    %c0_9 = arith.constant 0 : index
    %6 = vector.load %arg4[%c0_7, %c0_8, %c0_9] : memref<1x4x4xf32, #tpu.memory_space<vmem>>, vector<1x4x4xf32>
    %7 = vector.shape_cast %6 : vector<1x4x4xf32> to vector<4x4xf32>
    %8 = vector.shape_cast %5 : vector<4x4xf32> to vector<1x4x4xf32>
    tpu.vector_store %arg4[%c0_7, %c0_8, %c0_9], %8 {strides = array<i32>} : memref<1x4x4xf32, #tpu.memory_space<vmem>>, vector<1x4x4xf32>,
    return
  }
  func.func @transform_0(%arg0: i32) -> (i32, i32, i32) {
    %c0_i32 = arith.constant 0 : i32
    %c0_i32_0 = arith.constant 0 : i32
    %c0_i32_1 = arith.constant 0 : i32
    return %arg0, %c0_i32, %c0_i32_0 : i32, i32, i32
  }
  func.func @transform_1(%arg0: i32) -> (i32, i32) {
    %c0_i32 = arith.constant 0 : i32
    %c0_i32_0 = arith.constant 0 : i32
    %c0_i32_1 = arith.constant 0 : i32
    return %c0_i32, %c0_i32_0 : i32, i32
  }
  func.func @transform_2(%arg0: i32) -> (i32, i32) {
    %c0_i32 = arith.constant 0 : i32
    %c0_i32_0 = arith.constant 0 : i32
    %c0_i32_1 = arith.constant 0 : i32
    return %c0_i32, %c0_i32_0 : i32, i32
  }
  func.func @transform_3(%arg0: i32) -> (i32, i32, i32) {
    %c0_i32 = arith.constant 0 : i32
    %c0_i32_0 = arith.constant 0 : i32
    %c0_i32_1 = arith.constant 0 : i32
    return %arg0, %c0_i32, %c0_i32_0 : i32, i32, i32
  }
}

</mosaic_0001>

<bundles_post_ra>
// kernel: anti_alias_interpolation2d.1
= control target key start
LH: loop header
LB: loop body
LE: loop exit
PB: predicated region body
PF: predicated region fallthrough
CT: control target
= control target key end

     0   :  { %8 = vsyncpa [#allocation3], 0  ;;  %s916_s0 = inlined_call_operand.hbm [shape: f32[8,16,16], index: 0, kind: input, shape index: {}]   ;;  %s917_s1 = inlined_call_operand.vmem [shape: f32[4,16], index: 1, kind: input, shape index: {}]   ;;  %s918_s2 = inlined_call_operand.hbm [shape: f32[16,4], index: 2, kind: input, shape index: {}]   ;;  %s919_s3 = inlined_call_operand.hbm [shape: f32[8,4,4], index: 3, kind: output, shape index: {}]  }
   0x1   :  { %10 = vsyncpa [#allocation3 + $0x1], 0 }
   0x2   :  { %11 = vsyncpa [#allocation6], 0 }
   0x3   :  { %12 = vsyncpa [#allocation4], 0 }
   0x4   :  { %14 = vsyncpa [#allocation4 + $0x1], 0  ;;  %s716_s12 = smov 0   ;;  %s718_s13 = smov 0  }
   0x5   :  { %s720_s14 = smov 0   ;;  %s722_s15 = smov 0  }
   0x6 LB: > { %s737_s16 = sadd.s32 4294967295, %s686_s15   ;;  %s452_s17 = sadd.s32 4294967294, %s686_s15   ;;  %s686_s15 = sphi %s722_s15, %s938_s15   ;;  %s682_s14 = sphi %s720_s14, %s937_s14   ;;  %s678_s13 = sphi %s718_s13, %s936_s13   ;;  %s674_s12 = sphi %s716_s12, %s935_s12  }
   0x7   : > { %p40_p0 = scmp.ne.s32.totalorder %s678_s13, %s674_s12  ;;  %p920_p1 = scmp.eq.s32.totalorder %s737_s16, 0 }
   0x8   : > { %p112_p3 = scmp.eq.s32.totalorder %s452_s17, 7  ;;  %p453_p5 = scmp.ge.s32.totalorder %s686_s15, 1 }
   0x9   : > { %p746_p4 = por %p920_p1, %p40_p0  ;;  %p119_p7 = scmp.lt.s32.totalorder %s686_s15, 9 }
   0xa   : > { %p751_p6 = por %p112_p3, %p40_p0  ;;  %s688_s21 = smov [#allocation5]  }
   0xb   : > { %s923_s18 = scalar_select %p746_p4, 1, 0 }
   0xc   : > { %s924_s19 = scalar_select %p751_p6, 1, 0 }
   0xd   : > { %p756_p8 = pnand %p453_p5, %p119_p7  ;;  %s134_s22 = sshll.u32 %s688_s21, 4  ;;  %s135_s22 = int_to_ptr.vmem [resolvable:$true] %s134_s22 }
   0xe   : > { %s769_s24 = sadd.s32 1, %s686_s15   ;;  %s27_s25 = sadd.s32 1, %s682_s14 }
   0xf   : > { %s925_s20 = scalar_select %p756_p8, 1, 0 }
  0x10   : > { %p504_p9 = pneg %p756_p8  ;;  %s24_s26 = ssub.s32 %s686_s15, %s769_s24 }
  0x11   : > { %s558_s29 = scalar_lea.hbm %s918_s2, 256 }
  0x12   : > { %p764_p10 = pnand %p504_p9, %p920_p1  ;;  %p559_p11 = scmp.ne.s32.totalorder %s918_s2, %s558_s29 }
  0x13   : > { %p565_p3 = scmp.lt.u32.totalorder %s558_s29, %s918_s2 }
  0x14   : > { %p560_p12 = pneg %p764_p10 }
  0x16   : > { %p561_p13 = pnand %p560_p12, %p559_p11 }
  0x18   : > { %p562_p0 = pneg %p561_p13 }
  0x1a   : > { %p567_p5 = pnand %p565_p3, %p562_p0 }
  0x1c   : > { %570 = shalt.err (!%p567_p5)
}
  0x1d   : > { %s571_s7 = scalar_lea.vmem %s135_s22, 256  ;;  %p579_p2 = scmp.lt.s32.totalorder %s135_s22, %s135_s22 }
  0x1e   : > { %p572_p7 = scmp.ne.s32.totalorder %s135_s22, %s571_s7  ;;  %p580_p6 = scmp.lt.s32.totalorder %s571_s7, %s571_s7 }
  0x20   : > { %p574_p9 = pnand %p572_p7, %p560_p12  ;;  %p581_p4 = por %p580_p6, %p579_p2 }
  0x22   : > { %p575_p1 = pneg %p574_p9 }
  0x24   : > { %p582_p8 = pnand %p581_p4, %p575_p1 }
  0x26   : > { %585 = shalt.err (!%p582_p8)
}
  0x27   : > { %s689_s8 = smov 128   ;;  %s690_s9 = smov 8  }
  0x28   : > { %507 = dma.hbm_to_vmem [thread:$0]  (!%p764_p10), %s918_s2, 256, %s135_s22, [#allocation6], %s689_s8, %s689_s8, %s690_s9  }
  0x29   : > { %p25_p1 = scmp.eq.s32.totalorder %s24_s26, 0  ;;  %p34_p2 = scmp.ne.s32.totalorder %s682_s14, %s678_s13 }
  0x2a   : > { %p35_p4 = scmp.eq.s32.totalorder %s686_s15, 0  ;;  %p517_p6 = scmp.lt.s32.totalorder %s686_s15, 8 }
  0x2b   : > { %s798_s17 = scalar_select %p25_p1, %s682_s14, %s27_s25  }
  0x2c   : > { %p36_p8 = por %p35_p4, %p34_p2  ;;  %p927_p11 = scmp.eq.s32.totalorder %s737_s16, 7 }
  0x2d   : > { %s148_s23 = sand.u32 1, %s682_s14   ;;  %s469_s27 = sshll.u32 %s686_s15, 8 }
  0x2e   : > { %p802_p12 = por %p927_p11, %p34_p2  ;;  %s456_s28 = sshll.u32 %s148_s23, 4 }
  0x2f   : > { %s811_s4 = scalar_lea.hbm %s916_s0, %s469_s27  ;;  %s152_s22 = scalar_lea.vmem [#allocation2], %s456_s28 }
  0x30   : > { %s159_s25 = sshll.u32 %s152_s22, 4  ;;  %p813_p10 = pnand %p517_p6, %p36_p8  ;;  %s817_s25 = int_to_ptr.vmem [resolvable:$true] %s159_s25 }
  0x31   : > { %s819_s5 = scalar_lea.sflag [#allocation3], %s148_s23  ;;  %s586_s6 = scalar_lea.hbm %s811_s4, 256 }
  0x32   : > { %p587_p13 = scmp.ne.s32.totalorder %s811_s4, %s586_s6  ;;  %p588_p0 = pneg %p813_p10 }
  0x33   : > { %s591_s11 = scalar_lea.hbm %s916_s0, 2048  ;;  %p592_p7 = scmp.lt.u32.totalorder %s811_s4, %s916_s0 }
  0x34   : > { %p589_p3 = pnand %p588_p0, %p587_p13  ;;  %p593_p9 = scmp.lt.u32.totalorder %s591_s11, %s586_s6 }
  0x35   : > { %p595_p2 = scmp.lt.u32.totalorder %s586_s6, %s811_s4 }
  0x36   : > { %p590_p5 = pneg %p589_p3  ;;  %p594_p1 = por %p593_p9, %p592_p7 }
  0x38   : > { %p596_p4 = por %p595_p2, %p594_p1 }
  0x3a   : > { %p597_p6 = pnand %p596_p4, %p590_p5 }
  0x3c   : > { %600 = shalt.err (!%p597_p6)
}
  0x3d   : > { %s601_s23 = scalar_lea.vmem %s817_s25, 256  ;;  %s691_s29 = smov [#allocation2]  }
  0x3e   : > { %p602_p8 = scmp.ne.s32.totalorder %s817_s25, %s601_s23  ;;  %s606_s30 = sshll.u32 %s691_s29, 4  ;;  %s607_s30 = int_to_ptr.vmem [resolvable:$false] %s606_s30 }
  0x3f   : > { %s608_s22 = scalar_lea.vmem %s607_s30, 512  ;;  %p609_p3 = scmp.lt.s32.totalorder %s817_s25, %s607_s30 }
  0x40   : > { %p604_p11 = pnand %p602_p8, %p588_p0  ;;  %p610_p7 = scmp.lt.s32.totalorder %s608_s22, %s601_s23 }
  0x42   : > { %p605_p13 = pneg %p604_p11  ;;  %p611_p9 = por %p610_p7, %p609_p3 }
  0x44   : > { %p612_p1 = pnand %p611_p9, %p605_p13 }
  0x46   : > { %615 = shalt.err (!%p612_p1)
}
  0x47   : > { %511 = dma.hbm_to_vmem [thread:$0]  (!%p813_p10), %s811_s4, 256, %s817_s25, %s819_s5, %s689_s8, %s689_s8, %s690_s9  }
  0x48   : > { %p930_p0 = scmp.ne.s32.totalorder %s925_s20, 0 }
  0x49   : > { %s853_s6 = sand.u32 (!%p930_p0), 1, %s678_s13   ;;  %p931_p5 = scmp.ne.s32.totalorder (!%p930_p0), %s923_s18, 0 }
  0x4a   : > { %171 = sbr.rel (%p930_p0) target bundleno = 529 (0x211), region = 32  ;;  %s460_s7 = sshll.u32 (!%p930_p0), %s853_s6, 4 }
  0x4b   : > { %s174_s10 = scalar_lea.sflag (!%p930_p0), [#allocation3], %s853_s6  ;;  %s177_s11 = scalar_lea.vmem (!%p930_p0), [#allocation2], %s460_s7 }
  0x51   : > { %661 = dma.done.wait (%p931_p5), %s174_s10, 256  }
  0x52   : > { %663 = vsyncadd (%p931_p5), %s174_s10, 4294967040  ;;  %p932_p2 = scmp.eq.s32.totalorder %s737_s16, 0 }
  0x54   : > { %665 = dma.done.wait (%p932_p2), [#allocation6], 256   ;;  %p933_p10 = pmov %p932_p2 }
  0x55   : > { %v692_v0 = vmov 0.0|0.0   ;;  %vm693_vm0 = vmmov 0   ;;  %v694_v1 = vmov 0.0   ;;  %v204_v2 = vld [vmem:[%s177_s11] sm:$0xff]  ;;  %v205_v3 = vld [vmem:[%s177_s11 + $0x8] sm:$0xff]  ;;  %vm207_vm1 = vcmask 130048  }
  0x56   : > { %667 = vsyncadd (%p933_p10), [#allocation6], 4294967040  ;;  %490 = vmatprep.subr.bf16.mxu0 %v692_v0  ;;  %480 = vmatprep.mubr.msk.f32.mxu0 %vm693_vm0, %v694_v1  ;;  %v491_v4 = vpack.c.bf16 %v205_v3, %v204_v2  ;;  %v281_v5 = vld [vmem:[#allocation5] sm:$0xff]  ;;  %v282_v6 = vld [vmem:[#allocation5 + $0x8] sm:$0xff]  ;;  %s462_s8 = sshll.u32 %s853_s6, 2  ;;  %s466_s9 = sshll.u32 %s737_s16, 6 }
  0x57   : > { %493 = vmatprep.subr.bf16.mxu1 %v692_v0  ;;  %487 = vmatprep.mubr.msk.f32.mxu1 %vm693_vm0, %v694_v1  ;;  %v494_v7 = vpack.c.bf16 %v282_v6, %v281_v5  ;;  %v206_v8 = vld [vmem:[%s917_s1] sm:$0xf]  ;;  %s203_s4 = scalar_lea.vmem [#allocation7], %s462_s8  ;;  %vm356_vm2 = vcmask 27648   ;;  %s873_s27 = scalar_lea.hbm %s919_s3, %s466_s9 }
  0x58   : > { %492 = vmatpush3.bf16.msra.mxu0 %v491_v4  ;;  %s372_s25 = sshll.u32 %s203_s4, 4  ;;  %s359_s28 = scalar_lea.sflag [#allocation4], %s853_s6  ;;  %s875_s25 = int_to_ptr.vmem [resolvable:$true] %s372_s25 }
  0x59   : > { %495 = vmatpush3.bf16.msra.mxu1 %v494_v7  ;;  %s616_s23 = scalar_lea.vmem %s875_s25, 64  ;;  %s695_s16 = smov [#allocation7]  }
  0x5a   : > { %p617_p4 = scmp.ne.s32.totalorder %s875_s25, %s616_s23  ;;  %s620_s29 = sshll.u32 %s695_s16, 4  ;;  %s621_s29 = int_to_ptr.vmem [resolvable:$false] %s620_s29 }
  0x5b   : > { %481 = vmatmul.mubr.msk.f32.vlgmr.msra.gmra.mrb[0].mxu0 %vm207_vm1, %v206_v8  ;;  %s622_s30 = scalar_lea.vmem %s621_s29, 128  ;;  %p623_p11 = scmp.lt.s32.totalorder %s875_s25, %s621_s29 }
  0x5c   : > { %p618_p6 = pnand %p617_p4, %p802_p12  ;;  %p624_p13 = scmp.lt.s32.totalorder %s622_s30, %s616_s23 }
  0x5e   : > { %p619_p8 = pneg %p618_p6  ;;  %p625_p3 = por %p624_p13, %p623_p11 }
  0x60   : > { %p626_p7 = pnand %p625_p3, %p619_p8 }
 0x12e   : > { %v277_v9 = vpop.f32.mrb[0].mxu0 }
 0x12f   : > { %v482_v10 = vpop.f32.mrb[1].mxu0  ;;  %488 = vmatmul.mubr.msk.f32.vlgmr.msra.gmra.mrb[0].mxu1 %vm207_vm1, %v277_v9 }
 0x202   : > { %v352_v11 = vpop.f32.mrb[0].mxu1 }
 0x203   : > { %357 = vst.msk [vmem:[%s203_s4] sm:$0xf] %vm356_vm2, %v352_v11  ;;  %v489_v12 = vpop.f32.mrb[1].mxu1 }
 0x204   : > { %629 = shalt.err (!%p626_p7)
}
 0x205   : > { %s630_s22 = scalar_lea.hbm %s873_s27, 64  ;;  %s634_s10 = scalar_lea.hbm %s919_s3, 512 }
 0x206   : > { %p631_p9 = scmp.ne.s32.totalorder %s873_s27, %s630_s22  ;;  %p635_p5 = scmp.lt.u32.totalorder %s873_s27, %s919_s3 }
 0x207   : > { %p636_p2 = scmp.lt.u32.totalorder %s634_s10, %s630_s22  ;;  %p638_p4 = scmp.lt.u32.totalorder %s630_s22, %s873_s27 }
 0x208   : > { %p632_p1 = pnand %p631_p9, %p802_p12 }
 0x209   : > { %p637_p10 = por %p636_p2, %p635_p5 }
 0x20a   : > { %p633_p0 = pneg %p632_p1 }
 0x20b   : > { %p639_p6 = por %p638_p4, %p637_p10 }
 0x20d   : > { %p640_p8 = pnand %p639_p6, %p633_p0 }
 0x20f   : > { %643 = shalt.err (!%p640_p8)
}
 0x210   : > { %502 = dma.vmem_to_hbm [thread:$0]  (%p802_p12), %s875_s25, 64, %s873_s27, %s359_s28  }
 0x211 PF: > { %p519_p11 = scmp.ge.s32.totalorder %s686_s15, 2  ;;  %s384_s20 = sand.u32 1, %s674_s12  }
 0x212   : > { %p934_p13 = scmp.ne.s32.totalorder %s924_s19, 0  ;;  %s385_s8 = scalar_lea.sflag [#allocation4], %s384_s20 }
 0x214   : > { %p513_p3 = pnand %p519_p11, %p934_p13 }
 0x216   : > { %669 = dma.done.wait (!%p513_p3), %s385_s8, 64  }
 0x217   : > { %671 = vsyncadd (!%p513_p3), %s385_s8, 4294967232  ;;  %p17_p7 = scmp.ge.s32.totalorder %s769_s24, 10   ;;  %s935_s12 = smov %s678_s13 }
 0x218   : > { %s936_s13 = smov %s682_s14  ;;  %s937_s14 = smov %s798_s17 }
 0x219   : > { %s938_s15 = smov %s769_s24  ;;  %19 = sbr.rel (!%p17_p7) target bundleno = 6 (0x6), region = 81 }
 0x220   :  { %390 = vsyncpa [#allocation3], 1 }
 0x221   :  { %392 = vsyncpa [#allocation3 + $0x1], 1 }
 0x222   :  { %393 = vsyncpa [#allocation6], 1 }
 0x223   :  { %394 = vsyncpa [#allocation4], 1 }
 0x224   :  { %396 = vsyncpa [#allocation4 + $0x1], 1 }

</bundles_post_ra>
